<compile_context>
chip_gen: v5e
topology: v5e:2x2
jax: 0.10.0
libtpu: 0.0.40
codegen_flags: <defaults>
</compile_context>

<pallas_src>
import functools
from typing import NamedTuple

import jax
import jax.numpy as jnp
from jax import lax
from jax.experimental import pallas as pl
from jax.experimental.pallas import tpu as pltpu


def _round_up(x, m):
    return ((x + m - 1) // m) * m


class PreparedVocab(NamedTuple):
    """Vocabulary pre-laid-out for the decoder kernel ((Dp, Vp), V lane-dense)."""
    data: jax.Array        # (Dp, Vp), zero-padded, V on the lane axis
    v: int                 # real vocab size
    d: int                 # real hypervector width
    tile_v: int
    tile_d: int
    num_v_splits: int


def prepare_hdc_vocab(hdc_vocab, *, tile_v=2048, tile_d=2048, num_v_splits=2,
                      storage_dtype=None):
    """One-time vocab preparation.  Do this once and reuse on every call.

    hdc_vocab:     (V, D) vocabulary of hypervectors.
    storage_dtype: optional HBM storage dtype, e.g. jnp.int8 for bipolar +/-1
                   vocabularies (exact; 2-4x less HBM traffic).  None keeps
                   the input dtype (f32 inputs are a perf trap: 2x the bytes).
    """
    V, D = hdc_vocab.shape
    vocab = hdc_vocab if storage_dtype is None else hdc_vocab.astype(storage_dtype)

    # Tile sizes: multiples of 128 lanes, clamped to the (padded) problem size.
    tile_v = min(_round_up(tile_v, 128), _round_up(V, 128))
    tile_d = min(_round_up(tile_d, 128), _round_up(D, 128))
    num_v_splits = max(int(num_v_splits), 1)

    Vp = _round_up(V, tile_v * num_v_splits)
    Dp = _round_up(D, tile_d)

    # (D, V) layout: V on the lane axis -> lane-dense sims tiles and a clean
    # (B, tile_d) @ (tile_d, tile_v) MXU op, no in-kernel transpose.
    # Zero padding: padded D rows contribute exactly 0 to every dot product;
    # padded V lanes are masked to -inf inside the kernel.
    vocab_p = jnp.zeros((Dp, Vp), vocab.dtype).at[:D, :V].set(vocab.T)
    return PreparedVocab(vocab_p, V, D, tile_v, tile_d, num_v_splits)


def _hdc_decoder_kernel(enc_ref, vocab_ref, max_out_ref, idx_out_ref,
                        sims_acc, max_val, best_idx,
                        *, v_actual, tile_v, tile_d):
    # enc_ref:     (Bp, Dp)          VMEM, resident for the whole call
    # vocab_ref:   (TILE_D, TILE_V)  VMEM, double-buffered over the grid
    # max_out_ref: (1, Bp, 1) f32    per-V-split running max (written last step)
    # idx_out_ref: (1, Bp, 1) i32    per-V-split argmax       (written last step)
    # sims_acc:    (Bp, TILE_V) f32  D-reduction accumulator
    # max_val:     (Bp, 1) f32       running max across this split's V tiles
    # best_idx:    (Bp, 1) i32       running argmax across this split's V tiles
    c = pl.program_id(0)    # V-split index (parallel -> one per TC on v7x)
    vi = pl.program_id(1)   # V tile index within the split
    di = pl.program_id(2)   # D (reduction) tile index
    nv = pl.num_programs(1)
    nd = pl.num_programs(2)

    @pl.when(jnp.logical_and(vi == 0, di == 0))
    def _():
        max_val[...] = jnp.full_like(max_val, -jnp.inf)
        best_idx[...] = jnp.zeros_like(best_idx)

    # Partial similarities for this (V tile, D tile): MXU, f32 accumulate.
    d_start = pl.multiple_of(di * tile_d, tile_d)
    q = enc_ref[:, pl.ds(d_start, tile_d)]
    w = vocab_ref[...]
    if w.dtype != q.dtype:
        w = w.astype(q.dtype)   # e.g. int8 storage -> bf16; VPU cast hides under DMA
    partial = jnp.dot(q, w, preferred_element_type=jnp.float32)

    @pl.when(di == 0)
    def _():
        sims_acc[...] = partial           # direct assign: no zero-fill + RMW

    @pl.when(di != 0)
    def _():
        sims_acc[...] += partial

    @pl.when(di == nd - 1)
    def _():
        sims = sims_acc[...]                                    # (Bp, TILE_V)
        lane = lax.broadcasted_iota(jnp.int32, sims.shape, 1)
        gidx = (c * nv + vi) * tile_v + lane                    # global vocab idx
        sims = jnp.where(gidx < v_actual, sims, -jnp.inf)       # mask V padding

        tile_max = jnp.max(sims, axis=-1, keepdims=True)        # (Bp, 1)
        # First occurrence inside the tile: min global index among the maxima.
        cand = jnp.where(sims == tile_max, gidx, jnp.int32(2**31 - 1))
        tile_arg = jnp.min(cand, axis=-1, keepdims=True)        # (Bp, 1)

        # Strict '>' so earlier tiles win ties (torch.argmax first-occurrence).
        better = tile_max > max_val[...]
        max_val[...] = jnp.where(better, tile_max, max_val[...])
        best_idx[...] = jnp.where(better, tile_arg, best_idx[...])

    @pl.when(jnp.logical_and(vi == nv - 1, di == nd - 1))
    def _():
        max_out_ref[...] = max_val[...][None]
        idx_out_ref[...] = best_idx[...][None]


def hdc_decode(encoded_vectors, hdc_vocab, *, tile_v=2048, tile_d=2048,
               num_v_splits=2):
    """Pallas equivalent of HDCDecoder.forward.

    encoded_vectors: (D,) or (B, D) queries (bf16 recommended).
    hdc_vocab:       a PreparedVocab from prepare_hdc_vocab() (preferred: prep
                     once, reuse), or a raw (V, D) array (prepped on the fly).
    returns:         () or (B,) int32 token indices.
    """
    if not isinstance(hdc_vocab, PreparedVocab):
        hdc_vocab = prepare_hdc_vocab(hdc_vocab, tile_v=tile_v, tile_d=tile_d,
                                      num_v_splits=num_v_splits)
    vocab = hdc_vocab

    squeeze = encoded_vectors.ndim == 1
    enc = encoded_vectors[None, :] if squeeze else encoded_vectors
    B, D = enc.shape
    assert D == vocab.d, (D, vocab.d)

    tile_v, tile_d = vocab.tile_v, vocab.tile_d
    Dp, Vp = vocab.data.shape
    S = vocab.num_v_splits
    nv = Vp // (tile_v * S)        # V tiles per split
    nd = Dp // tile_d

    # bf16 packs 16 sublanes per vreg; batching also amortizes the single
    # vocab HBM pass over more queries (arithmetic intensity ~ B FLOP/byte).
    Bp = _round_up(max(B, 1), 16)
    enc_p = jnp.zeros((Bp, Dp), enc.dtype).at[:B, :D].set(enc)
    # TODO(synk): stream the query block per D tile instead of full residency
    #             if Bp*Dp ever outgrows VMEM (not the case for typical HDC).

    kernel = functools.partial(_hdc_decoder_kernel, v_actual=vocab.v,
                               tile_v=tile_v, tile_d=tile_d)

    vb = vocab.data.dtype.itemsize
    eb = enc_p.dtype.itemsize
    cost = pl.CostEstimate(
        flops=2 * Bp * Vp * Dp,
        transcendentals=0,
        # vocab read once + queries read once (resident) + tiny outputs.
        bytes_accessed=Vp * Dp * vb + Bp * Dp * eb + 2 * S * Bp * 4,
    )

    # VMEM budget: double-buffered vocab tile + (double-buffered) resident
    # queries + scratch accumulators; keep headroom under v7x's 64 MiB.
    vmem_need = (2 * tile_d * tile_v * vb
                 + 2 * Bp * Dp * eb
                 + Bp * tile_v * 4
                 + Bp * 8
                 + 4 * S * Bp * 8)
    vmem_limit = min(max(32 * 1024 * 1024, int(vmem_need * 1.25)),
                     64 * 1024 * 1024)

    max_out, idx_out = pl.pallas_call(
        kernel,
        out_shape=(jax.ShapeDtypeStruct((S, Bp, 1), jnp.float32),
                   jax.ShapeDtypeStruct((S, Bp, 1), jnp.int32)),
        grid_spec=pltpu.PrefetchScalarGridSpec(
            num_scalar_prefetch=0,
            grid=(S, nv, nd),                    # V split | V tiles | D (reduction) last
            in_specs=[
                # Queries: one resident block; constant index_map -> fetched once.
                pl.BlockSpec((Bp, Dp), lambda c, vi, di: (0, 0)),
                # Vocab: streamed tile; split c owns a contiguous V range.
                pl.BlockSpec((tile_d, tile_v),
                             lambda c, vi, di: (di, c * nv + vi)),
            ],
            out_specs=(
                pl.BlockSpec((1, Bp, 1), lambda c, vi, di: (c, 0, 0)),
                pl.BlockSpec((1, Bp, 1), lambda c, vi, di: (c, 0, 0)),
            ),
            scratch_shapes=[
                pltpu.VMEM((Bp, tile_v), jnp.float32),   # sims accumulator
                pltpu.VMEM((Bp, 1), jnp.float32),        # running max
                pltpu.VMEM((Bp, 1), jnp.int32),          # running argmax
            ],
        ),
        compiler_params=pltpu.CompilerParams(
            # V-split axis is order-independent (megacore-shardable on v7x);
            # the V and D axes carry scratch state.
            dimension_semantics=("parallel", "arbitrary", "arbitrary"),
            vmem_limit_bytes=vmem_limit,
        ),
        cost_estimate=cost,
    )(enc_p, vocab.data)

    # Combine per-split candidates: strict '>' keeps the lower split on ties
    # (lower splits cover lower vocab indices -> first-occurrence argmax).
    best_m = max_out[0]
    best_i = idx_out[0]
    for s in range(1, S):
        better = max_out[s] > best_m
        best_i = jnp.where(better, idx_out[s], best_i)
        best_m = jnp.where(better, max_out[s], best_m)

    out = best_i[:B, 0]
    return out[0] if squeeze else out


if __name__ == "__main__":
    key = jax.random.PRNGKey(0)
    k_vocab, k_enc, k_tok = jax.random.split(key, 3)

    D = 256   # hyperdimensional width (small for test)
    V = 384   # vocab size (multi-tile per split with tile_v=128; exercises masking)
    B = 5     # batch of queries (padded to 16 sublanes internally)

    # Deterministic synthetic HDC vocabulary: bipolar +/-1 hypervectors.
    vocab_f32 = jnp.sign(jax.random.normal(k_vocab, (V, D), dtype=jnp.float32))
    vocab_f32 = jnp.where(vocab_f32 == 0, 1.0, vocab_f32)

    # Encoded queries: noisy copies of random vocab hypervectors.
    true_tok = jax.random.randint(k_tok, (B,), 0, V)
    noise = 0.1 * jax.random.normal(k_enc, (B, D), dtype=jnp.float32)
    enc_f32 = vocab_f32[true_tok] + noise

    # bf16 queries + int8 vocab storage: minimal HBM traffic, exact for +/-1.
    encoded = enc_f32.astype(jnp.bfloat16)

    # Prep the vocab ONCE (transpose + pad + int8 shrink); reuse every call.
    # Tiny tiles + 2 V-splits to exercise the multi-tile / multi-split paths.
    vocab_prepped = prepare_hdc_vocab(vocab_f32, tile_v=128, tile_d=128,
                                      num_v_splits=2, storage_dtype=jnp.int8)

    decoded = hdc_decode(encoded, vocab_prepped)
    decoded = jax.block_until_ready(decoded)

    # Pure-JAX reference (same math as the PyTorch module), f32 accumulation.
    ref = jnp.argmax(
        jnp.dot(encoded.astype(jnp.float32), vocab_f32.T), axis=-1
    ).astype(jnp.int32)
    assert decoded.shape == (B,)
    assert decoded.dtype == jnp.int32
    assert bool(jnp.all(decoded == ref)), (decoded, ref)

    # Single-vector path matches the original module's scalar return.
    d0 = hdc_decode(encoded[0], vocab_prepped)
    d0 = jax.block_until_ready(d0)
    assert int(d0) == int(ref[0]), (int(d0), int(ref[0]))

    # Raw-(V, D) vocab convenience path (preps internally) also works.
    d_raw = hdc_decode(encoded, vocab_f32.astype(jnp.bfloat16),
                       tile_v=128, tile_d=128)
    d_raw = jax.block_until_ready(d_raw)
    assert bool(jnp.all(d_raw == ref)), (d_raw, ref)

    print("KERNEL_OK")
</pallas_src>

<mosaic_0001>
module attributes {stable_mosaic.version = 11 : i64} {
  func.func @_hdc_decoder_kernel(%arg0: i32, %arg1: i32, %arg2: i32, %arg3: memref<16x256xbf16, #tpu.memory_space<vmem>>, %arg4: memref<128x128xi8, #tpu.memory_space<vmem>>, %arg5: memref<1x16x1xf32, #tpu.memory_space<vmem>>, %arg6: memref<1x16x1xi32, #tpu.memory_space<vmem>>, %arg7: memref<16x128xf32, #tpu.memory_space<vmem>>, %arg8: memref<16x1xf32, #tpu.memory_space<vmem>>, %arg9: memref<16x1xi32, #tpu.memory_space<vmem>>) attributes {dimension_semantics = [#tpu.dimension_semantics<parallel>, #tpu.dimension_semantics<arbitrary>, #tpu.dimension_semantics<arbitrary>], iteration_bounds = array<i64: 2, 2, 2>, scalar_prefetch = 0 : i64, scratch_operands = 3 : i64, tpu.core_type = #tpu.core_type<tc>, window_params = [{pipeline_mode = #tpu.pipeline_mode<synchronous>, transform_indices = @transform_0, window_bounds = array<i64: 16, 256>}, {transform_indices = @transform_1, window_bounds = array<i64: 128, 128>}, {transform_indices = @transform_2, window_bounds = array<i64: 1, 16, 1>}, {transform_indices = @transform_3, window_bounds = array<i64: 1, 16, 1>}]} {
    %c0_i32 = arith.constant 0 : i32
    %0 = arith.cmpi eq, %arg1, %c0_i32 : i32
    %c0_i32_0 = arith.constant 0 : i32
    %1 = arith.cmpi eq, %arg2, %c0_i32_0 : i32
    %2 = arith.andi %0, %1 : i1
    %3 = arith.extui %2 : i1 to i32
    %c0_i32_1 = arith.constant 0 : i32
    %4 = arith.cmpi ne, %3, %c0_i32_1 : i32
    scf.if %4 {
      %cst_12 = arith.constant 0xFF800000 : f32
      %26 = vector.broadcast %cst_12 : f32 to vector<16x1xf32>
      %c0_13 = arith.constant 0 : index
      %c0_14 = arith.constant 0 : index
      %27 = vector.load %arg8[%c0_13, %c0_14] : memref<16x1xf32, #tpu.memory_space<vmem>>, vector<16x1xf32>
      tpu.vector_store %arg8[%c0_13, %c0_14], %26 {strides = array<i32>} : memref<16x1xf32, #tpu.memory_space<vmem>>, vector<16x1xf32>,
      %c0_i32_15 = arith.constant 0 : i32
      %28 = vector.broadcast %c0_i32_15 : i32 to vector<16x1xi32>
      %c0_16 = arith.constant 0 : index
      %c0_17 = arith.constant 0 : index
      %29 = vector.load %arg9[%c0_16, %c0_17] : memref<16x1xi32, #tpu.memory_space<vmem>>, vector<16x1xi32>
      tpu.vector_store %arg9[%c0_16, %c0_17], %28 {strides = array<i32>} : memref<16x1xi32, #tpu.memory_space<vmem>>, vector<16x1xi32>,
    } else {
    }
    %c128_i32 = arith.constant 128 : i32
    %5 = arith.muli %arg2, %c128_i32 : i32
    %6 = tpu.assume_multiple %5, 128 : i32
    %c0 = arith.constant 0 : index
    %7 = arith.index_cast %6 : i32 to index
    %8 = vector.load %arg3[%c0, %7] : memref<16x256xbf16, #tpu.memory_space<vmem>>, vector<16x128xbf16>
    %c0_2 = arith.constant 0 : index
    %c0_3 = arith.constant 0 : index
    %9 = vector.load %arg4[%c0_2, %c0_3] : memref<128x128xi8, #tpu.memory_space<vmem>>, vector<128x128xi8>
    %10 = arith.sitofp %9 : vector<128x128xi8> to vector<128x128xbf16>
    %cst = arith.constant dense<0.000000e+00> : vector<16x128xf32>
    %11 = tpu.matmul %8, %10, %cst {dimension_numbers = #tpu.dot_dimension_numbers<[1], [0], [0], [1], [0, 0, 1, 1], [], []>} : vector<16x128xbf16>, vector<128x128xbf16>, vector<16x128xf32> -> vector<16x128xf32>
    %c0_i32_4 = arith.constant 0 : i32
    %12 = arith.cmpi eq, %arg2, %c0_i32_4 : i32
    %13 = arith.extui %12 : i1 to i32
    %c0_i32_5 = arith.constant 0 : i32
    %14 = arith.cmpi ne, %13, %c0_i32_5 : i32
    scf.if %14 {
      %c0_12 = arith.constant 0 : index
      %c0_13 = arith.constant 0 : index
      %26 = vector.load %arg7[%c0_12, %c0_13] : memref<16x128xf32, #tpu.memory_space<vmem>>, vector<16x128xf32>
      tpu.vector_store %arg7[%c0_12, %c0_13], %11 {strides = array<i32>} : memref<16x128xf32, #tpu.memory_space<vmem>>, vector<16x128xf32>,
    } else {
    }
    %c0_i32_6 = arith.constant 0 : i32
    %15 = arith.cmpi ne, %arg2, %c0_i32_6 : i32
    %16 = arith.extui %15 : i1 to i32
    %c0_i32_7 = arith.constant 0 : i32
    %17 = arith.cmpi ne, %16, %c0_i32_7 : i32
    scf.if %17 {
      %c0_12 = arith.constant 0 : index
      %c0_13 = arith.constant 0 : index
      %26 = vector.load %arg7[%c0_12, %c0_13] : memref<16x128xf32, #tpu.memory_space<vmem>>, vector<16x128xf32>
      %27 = arith.addf %26, %11 : vector<16x128xf32>
      %c0_14 = arith.constant 0 : index
      %c0_15 = arith.constant 0 : index
      %28 = vector.load %arg7[%c0_14, %c0_15] : memref<16x128xf32, #tpu.memory_space<vmem>>, vector<16x128xf32>
      tpu.vector_store %arg7[%c0_14, %c0_15], %27 {strides = array<i32>} : memref<16x128xf32, #tpu.memory_space<vmem>>, vector<16x128xf32>,
    } else {
    }
    %c1_i32 = arith.constant 1 : i32
    %18 = arith.cmpi eq, %arg2, %c1_i32 : i32
    %19 = arith.extui %18 : i1 to i32
    %c0_i32_8 = arith.constant 0 : i32
    %20 = arith.cmpi ne, %19, %c0_i32_8 : i32
    scf.if %20 {
      %c0_12 = arith.constant 0 : index
      %c0_13 = arith.constant 0 : index
      %26 = vector.load %arg7[%c0_12, %c0_13] : memref<16x128xf32, #tpu.memory_space<vmem>>, vector<16x128xf32>
      %27 = tpu.iota {dimensions = array<i32: 1>} : vector<16x128xi32>
      %c2_i32 = arith.constant 2 : i32
      %28 = arith.muli %arg0, %c2_i32 : i32
      %29 = arith.addi %28, %arg1 : i32
      %c128_i32_14 = arith.constant 128 : i32
      %30 = arith.muli %29, %c128_i32_14 : i32
      %31 = vector.broadcast %30 : i32 to vector<16x128xi32>
      %32 = arith.addi %31, %27 : vector<16x128xi32>
      %c384_i32 = arith.constant 384 : i32
      %33 = vector.broadcast %c384_i32 : i32 to vector<16x128xi32>
      %34 = arith.cmpi slt, %32, %33 : vector<16x128xi32>
      %cst_15 = arith.constant 0xFF800000 : f32
      %35 = vector.broadcast %cst_15 : f32 to vector<16x128xf32>
      %36 = arith.select %34, %26, %35 : vector<16x128xi1>, vector<16x128xf32>
      %cst_16 = arith.constant dense<0xFF800000> : vector<16xf32>
      %37 = vector.multi_reduction <maximumf>, %36, %cst_16 [1] : vector<16x128xf32> to vector<16xf32>
      %38 = vector.shape_cast %37 : vector<16xf32> to vector<16x1xf32>
      %39 = vector.broadcast %38 : vector<16x1xf32> to vector<16x128xf32>
      %40 = arith.cmpf oeq, %36, %39 : vector<16x128xf32>
      %c2147483647_i32 = arith.constant 2147483647 : i32
      %41 = vector.broadcast %c2147483647_i32 : i32 to vector<16x128xi32>
      %42 = arith.select %40, %32, %41 : vector<16x128xi1>, vector<16x128xi32>
      %cst_17 = arith.constant dense<2147483647> : vector<16xi32>
      %43 = vector.multi_reduction <minsi>, %42, %cst_17 [1] : vector<16x128xi32> to vector<16xi32>
      %44 = vector.shape_cast %43 : vector<16xi32> to vector<16x1xi32>
      %c0_18 = arith.constant 0 : index
      %c0_19 = arith.constant 0 : index
      %45 = vector.load %arg8[%c0_18, %c0_19] : memref<16x1xf32, #tpu.memory_space<vmem>>, vector<16x1xf32>
      %46 = arith.cmpf ogt, %38, %45 : vector<16x1xf32>
      %c0_20 = arith.constant 0 : index
      %c0_21 = arith.constant 0 : index
      %47 = vector.load %arg8[%c0_20, %c0_21] : memref<16x1xf32, #tpu.memory_space<vmem>>, vector<16x1xf32>
      %48 = arith.select %46, %38, %47 : vector<16x1xi1>, vector<16x1xf32>
      %c0_22 = arith.constant 0 : index
      %c0_23 = arith.constant 0 : index
      %49 = vector.load %arg8[%c0_22, %c0_23] : memref<16x1xf32, #tpu.memory_space<vmem>>, vector<16x1xf32>
      tpu.vector_store %arg8[%c0_22, %c0_23], %48 {strides = array<i32>} : memref<16x1xf32, #tpu.memory_space<vmem>>, vector<16x1xf32>,
      %c0_24 = arith.constant 0 : index
      %c0_25 = arith.constant 0 : index
      %50 = vector.load %arg9[%c0_24, %c0_25] : memref<16x1xi32, #tpu.memory_space<vmem>>, vector<16x1xi32>
      %51 = arith.select %46, %44, %50 : vector<16x1xi1>, vector<16x1xi32>
      %c0_26 = arith.constant 0 : index
      %c0_27 = arith.constant 0 : index
      %52 = vector.load %arg9[%c0_26, %c0_27] : memref<16x1xi32, #tpu.memory_space<vmem>>, vector<16x1xi32>
      tpu.vector_store %arg9[%c0_26, %c0_27], %51 {strides = array<i32>} : memref<16x1xi32, #tpu.memory_space<vmem>>, vector<16x1xi32>,
    } else {
    }
    %c1_i32_9 = arith.constant 1 : i32
    %21 = arith.cmpi eq, %arg1, %c1_i32_9 : i32
    %c1_i32_10 = arith.constant 1 : i32
    %22 = arith.cmpi eq, %arg2, %c1_i32_10 : i32
    %23 = arith.andi %21, %22 : i1
    %24 = arith.extui %23 : i1 to i32
    %c0_i32_11 = arith.constant 0 : i32
    %25 = arith.cmpi ne, %24, %c0_i32_11 : i32
    scf.if %25 {
      %c0_12 = arith.constant 0 : index
      %c0_13 = arith.constant 0 : index
      %26 = vector.load %arg8[%c0_12, %c0_13] : memref<16x1xf32, #tpu.memory_space<vmem>>, vector<16x1xf32>
      %27 = vector.shape_cast %26 : vector<16x1xf32> to vector<1x16x1xf32>
      %c0_14 = arith.constant 0 : index
      %c0_15 = arith.constant 0 : index
      %c0_16 = arith.constant 0 : index
      %28 = vector.load %arg5[%c0_14, %c0_15, %c0_16] : memref<1x16x1xf32, #tpu.memory_space<vmem>>, vector<1x16x1xf32>
      tpu.vector_store %arg5[%c0_14, %c0_15, %c0_16], %27 {strides = array<i32>} : memref<1x16x1xf32, #tpu.memory_space<vmem>>, vector<1x16x1xf32>,
      %c0_17 = arith.constant 0 : index
      %c0_18 = arith.constant 0 : index
      %29 = vector.load %arg9[%c0_17, %c0_18] : memref<16x1xi32, #tpu.memory_space<vmem>>, vector<16x1xi32>
      %30 = vector.shape_cast %29 : vector<16x1xi32> to vector<1x16x1xi32>
      %c0_19 = arith.constant 0 : index
      %c0_20 = arith.constant 0 : index
      %c0_21 = arith.constant 0 : index
      %31 = vector.load %arg6[%c0_19, %c0_20, %c0_21] : memref<1x16x1xi32, #tpu.memory_space<vmem>>, vector<1x16x1xi32>
      tpu.vector_store %arg6[%c0_19, %c0_20, %c0_21], %30 {strides = array<i32>} : memref<1x16x1xi32, #tpu.memory_space<vmem>>, vector<1x16x1xi32>,
    } else {
    }
    return
  }
  func.func @transform_0(%arg0: i32, %arg1: i32, %arg2: i32) -> (i32, i32) {
    %c0_i32 = arith.constant 0 : i32
    %c0_i32_0 = arith.constant 0 : i32
    %c0_i32_1 = arith.constant 0 : i32
    return %c0_i32, %c0_i32_0 : i32, i32
  }
  func.func @transform_1(%arg0: i32, %arg1: i32, %arg2: i32) -> (i32, i32) {
    %c2_i32 = arith.constant 2 : i32
    %0 = arith.muli %arg0, %c2_i32 : i32
    %1 = arith.addi %0, %arg1 : i32
    %c0_i32 = arith.constant 0 : i32
    return %arg2, %1 : i32, i32
  }
  func.func @transform_2(%arg0: i32, %arg1: i32, %arg2: i32) -> (i32, i32, i32) {
    %c0_i32 = arith.constant 0 : i32
    %c0_i32_0 = arith.constant 0 : i32
    %c0_i32_1 = arith.constant 0 : i32
    return %arg0, %c0_i32, %c0_i32_0 : i32, i32, i32
  }
  func.func @transform_3(%arg0: i32, %arg1: i32, %arg2: i32) -> (i32, i32, i32) {
    %c0_i32 = arith.constant 0 : i32
    %c0_i32_0 = arith.constant 0 : i32
    %c0_i32_1 = arith.constant 0 : i32
    return %arg0, %c0_i32, %c0_i32_0 : i32, i32, i32
  }
}

</mosaic_0001>

<bundles_post_ra>
// kernel: tpu_custom_call.1
= control target key start
LH: loop header
LB: loop body
LE: loop exit
PB: predicated region body
PF: predicated region fallthrough
CT: control target
= control target key end

     0   :  { %s1083_s0 = inlined_call_operand.hbm [shape: bf16[16,256], index: 0, kind: input, shape index: {}]   ;;  %s1084_s1 = inlined_call_operand.hbm [shape: s8[256,512], index: 1, kind: input, shape index: {}]   ;;  %s1085_s2 = inlined_call_operand.vmem [shape: f32[2,16,1], index: 2, kind: output, shape index: {0}]   ;;  %s1086_s3 = inlined_call_operand.vmem [shape: s32[2,16,1], index: 3, kind: output, shape index: {1}]  }
   0x1   :  { %1095 = sst [smem:[#allocation16_spill]] %s1083_s0 }
   0x2   :  { %1096 = sst [smem:[#allocation17_spill]] %s1085_s2 }
   0x3   :  { %1097 = sst [smem:[#allocation18_spill]] %s1086_s3 }
   0x4   :  { %9 = vsyncpa [#allocation6], 0 }
   0x5   :  { %10 = vsyncpa [#allocation8], 0 }
   0x6   :  { %12 = vsyncpa [#allocation8 + $0x1], 0  ;;  %s881_s12 = smov 0   ;;  %s883_s13 = smov 0  }
   0x7   :  { %s885_s14 = smov 0   ;;  %s887_s15 = smov 0  }
   0x8   :  { %s889_s16 = smov 0   ;;  %s891_s17 = smov 0  }
   0x9   :  { %s893_s18 = smov 0   ;;  %s895_s19 = smov 0  }
   0xa   :  { %s897_s20 = smov 0   ;;  %s899_s21 = smov 0  }
   0xb LB: > { %1098 = sst [smem:[#allocation11_spill]] %s829_s15  ;;  %s568_s22 = sadd.s32 4294967295, %s853_s21   ;;  %s853_s21 = sphi %s899_s21, %s18_s21   ;;  %s849_s20 = sphi %s897_s20, %s1130_s20   ;;  %s845_s19 = sphi %s895_s19, %s1129_s19   ;;  %s841_s18 = sphi %s893_s18, %s1128_s18   ;;  %s837_s17 = sphi %s891_s17, %s1121_s17   ;;  %s833_s16 = sphi %s889_s16, %s1127_s16   ;;  %s829_s15 = sphi %s887_s15, %s1126_s15   ;;  %s825_s14 = sphi %s885_s14, %s1125_s14   ;;  %s821_s13 = sphi %s883_s13, %s1124_s13   ;;  %s817_s12 = sphi %s881_s12, %s1123_s12  }
   0xc   : > { %1099 = sst [smem:[#allocation12_spill]] %s833_s16  ;;  %p84_p0 = scmp.ne.s32.totalorder %s821_s13, %s817_s12 }
   0xd   : > { %1100 = sst [smem:[#allocation13_spill]] %s845_s19  ;;  %p931_p1 = scmp.eq.s32.totalorder %s568_s22, 0 }
   0xe   : > { %1101 = sst [smem:[#allocation14_spill]] %s849_s20  ;;  %p572_p2 = scmp.ge.s32.totalorder %s853_s21, 1 }
   0xf   : > { %p147_p3 = scmp.lt.s32.totalorder %s853_s21, 9  ;;  %p939_p4 = por %p931_p1, %p84_p0 }
  0x10   : > { %s1104_s0 = sld [smem:[#allocation16_spill]]  ;;  %s855_s29 = smov [#allocation5]  }
  0x11   : > { %p946_p5 = pnand %p572_p2, %p147_p3  ;;  %s160_s30 = sshll.u32 %s855_s29, 4  ;;  %s161_s30 = int_to_ptr.vmem [resolvable:$true] %s160_s30 }
  0x12   : > { %s1087_s4 = smov 128   ;;  %s1088_s5 = smov 8  }
  0x13   : > { %p610_p6 = pneg %p946_p5  ;;  %s30_s6 = sadd.s32 1, %s841_s18 }
  0x14   : > { %p31_p8 = scmp.ge.s32.totalorder %s30_s6, 2  ;;  %s33_s7 = sadd.s32 1, %s845_s19 }
  0x15   : > { %p611_p7 = pnand %p610_p6, %p931_p1  ;;  %s37_s8 = sadd.s32 1, %s849_s20 }
  0x16   : > { %s158_s27 = sshll.u32 %s1104_s0, 4  ;;  %s570_s9 = sshll.u32 %s849_s20, 1  ;;  %s159_s27 = int_to_ptr.hbm [resolvable:$true] %s158_s27 }
  0x17   : > { %613 = dma.hbm_to_vmem [thread:$0]  (!%p611_p7), %s159_s27, 256, %s161_s30, [#allocation6], %s1087_s4, %s1087_s4, %s1088_s5  }
  0x18   : > { %s1132_s6 = smov (%p31_p8, %s30_s6), 0  ;;  %s1134_s7 = smov (!%p31_p8, %s33_s7), %s845_s19 }
  0x19   : > { %1106 = sst [smem:[#allocation15_spill]] %s1132_s6  ;;  %s63_s10 = sadd.s32 %s845_s19, %s570_s9 }
  0x1a   : > { %s66_s11 = ssub.s32 %s841_s18, %s1132_s6  ;;  %p35_p9 = scmp.ge.s32.totalorder %s1134_s7, 2 }
  0x1b   : > { %s71_s12 = sadd.s32 1, %s825_s14  ;;  %p78_p10 = scmp.ne.s32.totalorder %s825_s14, %s821_s13 }
  0x1c   : > { %p79_p11 = scmp.eq.s32.totalorder %s853_s21, 0  ;;  %s1136_s7 = smov (%p35_p9, %s1134_s7), 0 }
  0x1d   : > { %s1138_s8 = smov (!%p35_p9, %s37_s8), %s849_s20  ;;  %p619_p13 = scmp.lt.s32.totalorder %s853_s21, 8 }
  0x1e   : > { %p974_p12 = por %p79_p11, %p78_p10  ;;  %p39_p0 = scmp.ge.s32.totalorder %s1138_s8, 2 }
  0x1f   : > { %s174_s25 = sand.u32 1, %s825_s14   ;;  %s600_s27 = sshll.u32 %s841_s18, 4 }
  0x20   : > { %s575_s26 = sshll.u32 %s174_s25, 5  ;;  %s1140_s8 = smov (%p39_p0, %s1138_s8), 0 }
  0x21   : > { %s571_s29 = sshll.u32 %s1140_s8, 1  ;;  %s185_s30 = sadd.s32 %s600_s27, %s63_s10 }
  0x22   : > { %s65_s9 = sadd.s32 %s571_s29, %s1136_s7  ;;  %s579_s4 = sshll.u32 %s185_s30, 3 }
  0x23   : > { %s67_s5 = ssub.s32 %s63_s10, %s65_s9  ;;  %s187_s20 = scalar_lea.hbm %s1084_s1, %s579_s4 }
  0x24   : > { %s68_s19 = sor.u32 %s67_s5, %s66_s11  ;;  %s188_s3 = sshll.u32 %s187_s20, 4  ;;  %s189_s3 = int_to_ptr.hbm [resolvable:$true] %s188_s3 }
  0x25   : > { %p69_p2 = scmp.eq.s32.totalorder %s68_s19, 0  ;;  %s178_s2 = scalar_lea.vmem [#allocation7], %s575_s26 }
  0x26   : > { %s190_s15 = sshll.u32 %s178_s2, 4  ;;  %p615_p3 = pnand %p619_p13, %p974_p12  ;;  %s191_s15 = int_to_ptr.vmem [resolvable:$true] %s190_s15 }
  0x27   : > { %s993_s16 = scalar_select %p69_p2, %s825_s14, %s71_s12  }
  0x28   : > { %s175_s27 = scalar_lea.sflag [#allocation8], %s174_s25  ;;  %s858_s29 = smov 512  }
  0x29   : > { %s1108_s30 = smov 8   ;;  %s1109_s10 = smov 128  }
  0x2a   : > { %617 = dma.hbm_to_vmem [thread:$0]  (!%p615_p3), %s189_s3, 512, %s191_s15, %s175_s27, %s858_s29, %s1109_s10, %s1108_s30  }
  0x2b   : > { %202 = sbr.rel (%p946_p5) target bundleno = 670 (0x29e), region = 28 }
  0x30   : > { %808 = dma.done.wait (%p931_p1), [#allocation6], 256  }
  0x31   : > { %810 = vsyncadd (%p931_p1), [#allocation6], 4294967040  ;;  %s209_s0 = sand.u32 1, %s821_s13  }
  0x32   : > { %s582_s2 = sshll.u32 %s209_s0, 5  ;;  %s210_s19 = scalar_lea.sflag [#allocation8], %s209_s0 }
  0x33   : > { %s1004_s20 = scalar_lea.vmem [#allocation7], %s582_s2 }
  0x34   : > { %812 = dma.done.wait (%p939_p4), %s210_s19, 512  }
  0x35   : > { %814 = vsyncadd (%p939_p4), %s210_s19, 4294966784  ;;  %s1110_s3 = sld [smem:[#allocation12_spill]]  ;;  %p245_p5 = scmp.lt.s32.totalorder %s837_s17, 1 }
  0x36   : > { %s1111_s15 = sld [smem:[#allocation11_spill]] }
  0x37   : > { %s246_s23 = scalar_select %p245_p5, %s837_s17, 1 }
  0x38   : > { %s1112_s6 = sld [smem:[#allocation17_spill]] }
  0x39   : > { %s601_s28 = sshll.u32 %s246_s23, 4  ;;  %s1113_s22 = sld [smem:[#allocation18_spill]] }
  0x3b   : > { %p255_p6 = scmp.eq.s32.totalorder %s1110_s3, 0 }
  0x3c   : > { %p256_p1 = scmp.eq.s32.totalorder %s1111_s15, 0 }
  0x3e   : > { %p257_p7 = pnand %p256_p1, %p255_p6  ;;  %s1019_s11 = scalar_lea.vmem %s1112_s6, %s601_s28 }
  0x3f   : > { %s1024_s25 = scalar_lea.vmem %s1113_s22, %s601_s28 }
  0x40   : > { %260 = sbr.rel (%p257_p7) target bundleno = 74 (0x4a), region = 40 }
  0x45   : > { %vm261_vm0 = vcmask 7168   ;;  %v859_v0 = vmov -inf   ;;  %v860_v1 = vmov 0  }
  0x46   : > { %262 = vst.msk [vmem:[#allocation3] sm:$0xff] %vm261_vm0, %v859_v0 }
  0x47   : > { %263 = vst.msk [vmem:[#allocation3 + $0x8] sm:$0xff] %vm261_vm0, %v859_v0 }
  0x48   : > { %264 = vst.msk [vmem:[#allocation4] sm:$0xff] %vm261_vm0, %v860_v1 }
  0x49   : > { %265 = vst.msk [vmem:[#allocation4 + $0x8] sm:$0xff] %vm261_vm0, %v860_v1 }
  0x4a PF: > { %v276_v2 = vld [vmem:[%s1004_s20 + $0x18] sm:$0xff]  ;;  %v275_v3 = vld [vmem:[%s1004_s20 + $0x10] sm:$0xff]  ;;  %v274_v20 = vld [vmem:[%s1004_s20 + $0x8] sm:$0xff]  ;;  %s1114_s26 = sld [smem:[#allocation11_spill]] }
  0x4b   : > { %v291_v4 = vunpack.c.2.s8 %v276_v2  ;;  %v292_v5 = vunpack.c.3.s8 %v276_v2  ;;  %v289_v6 = vunpack.c.0.s8 %v276_v2  ;;  %v290_v7 = vunpack.c.1.s8 %v276_v2  ;;  %v273_v31 = vld [vmem:[%s1004_s20] sm:$0xff] }
  0x4c   : > { %v287_v8 = vunpack.c.2.s8 %v275_v3  ;;  %v288_v9 = vunpack.c.3.s8 %v275_v3  ;;  %v285_v15 = vunpack.c.0.s8 %v275_v3  ;;  %v286_v16 = vunpack.c.1.s8 %v275_v3 }
  0x4d   : > { %v307_v10 = vcvt.s32.f32 %v291_v4  ;;  %v308_v11 = vcvt.s32.f32 %v292_v5  ;;  %v305_v12 = vcvt.s32.f32 %v289_v6  ;;  %v306_v13 = vcvt.s32.f32 %v290_v7 }
  0x4e   : > { %v303_v18 = vcvt.s32.f32 %v287_v8  ;;  %v304_v19 = vcvt.s32.f32 %v288_v9  ;;  %v301_v21 = vcvt.s32.f32 %v285_v15  ;;  %v302_v22 = vcvt.s32.f32 %v286_v16 }
  0x4f   : > { %v316_v14 = vpack.c.bf16 %v308_v11, %v307_v10  ;;  %v315_v17 = vpack.c.bf16 %v306_v13, %v305_v12  ;;  %v283_v24 = vunpack.c.2.s8 %v274_v20  ;;  %v284_v25 = vunpack.c.3.s8 %v274_v20 }
  0x50   : > { %v314_v23 = vpack.c.bf16 %v304_v19, %v303_v18  ;;  %v313_v26 = vpack.c.bf16 %v302_v22, %v301_v21  ;;  %v281_v29 = vunpack.c.0.s8 %v274_v20  ;;  %v282_v30 = vunpack.c.1.s8 %v274_v20  ;;  %s587_s9 = sshll.u32 %s1114_s26, 7  ;;  %p593_p4 = scmp.ne.s32.totalorder %s1114_s26, 0 }
  0x51   : > { %323 = vmatpush.bf16.msra.mxu0 %v316_v14  ;;  %v299_v27 = vcvt.s32.f32 %v283_v24  ;;  %v300_v28 = vcvt.s32.f32 %v284_v25  ;;  %v279_v32 = vunpack.c.2.s8 %v273_v31  ;;  %v280_v36 = vunpack.c.3.s8 %v273_v31  ;;  %s267_s27 = sshra.s32 %s587_s9, 7 }
  0x52   : > { %v297_v34 = vcvt.s32.f32 %v281_v29  ;;  %v298_v35 = vcvt.s32.f32 %v282_v30  ;;  %v277_v37 = vunpack.c.0.s8 %v273_v31  ;;  %v278_v41 = vunpack.c.1.s8 %v273_v31  ;;  %s588_s29 = sshll.u32 %s267_s27, 2 }
  0x53   : > { %v312_v33 = vpack.c.bf16 %v300_v28, %v299_v27  ;;  %v295_v39 = vcvt.s32.f32 %v279_v32  ;;  %v296_v40 = vcvt.s32.f32 %v280_v36  ;;  %s270_s30 = scalar_lea.vmem [#allocation5], %s588_s29 }
  0x54   : > { %v311_v38 = vpack.c.bf16 %v298_v35, %v297_v34  ;;  %v293_v43 = vcvt.s32.f32 %v277_v37  ;;  %v294_v44 = vcvt.s32.f32 %v278_v41  ;;  %v591_v46 = vld [vmem:[%s270_s30] sm:$0xf]  ;;  %v603_v47 = vld [vmem:[%s270_s30 + $0x4] sm:$0xf0] }
  0x55   : > { %324 = vmatpush.bf16.msra.mxu0 %v315_v17  ;;  %v310_v42 = vpack.c.bf16 %v296_v40, %v295_v39  ;;  %v592_v48 = vor.u32 %v603_v47, %v591_v46 }
  0x56   : > { %v309_v45 = vpack.c.bf16 %v294_v44, %v293_v43 }
  0x59   : > { %325 = vmatpush.bf16.msra.mxu0 %v314_v23 }
  0x5d   : > { %326 = vmatpush.bf16.msra.mxu0 %v313_v26 }
  0x61   : > { %327 = vmatpush.bf16.msra.mxu0 %v312_v33 }
  0x65   : > { %328 = vmatpush.bf16.msra.mxu0 %v311_v38 }
  0x69   : > { %329 = vmatpush.bf16.msra.mxu0 %v310_v42 }
  0x6d   : > { %330 = vmatpush.bf16.msra.mxu0 %v309_v45 }
  0x70   : > { %331 = vmatmul.bf16.vlgmr.msra.gmra.mxu0 %v592_v48 }
  0xed   : > { %v332_v49 = vpop.f32.mrf.mxu0 }
  0xf1   : > { %339 = sbr.rel (%p593_p4) target bundleno = 248 (0xf8), region = 44 }
  0xf5   : > { %v334_v50 = vpop.f32.mrf.mxu0 }
  0xf6   : > { %340 = vst [vmem:[#allocation2] sm:$0xff] %v332_v49 }
  0xf7   : > { %341 = vst [vmem:[#allocation2 + $0x8] sm:$0xff] %v334_v50 }
  0xf8 PF: > { %345 = sbr.rel (%p256_p1) target bundleno = 259 (0x103), region = 48 }
  0xfe   : > { %v347_v52 = vld [vmem:[#allocation2 + $0x8] sm:$0xff] }
  0xff   : > { %v346_v51 = vld [vmem:[#allocation2] sm:$0xff]  ;;  %v349_v54 = vadd.f32 %v347_v52, %v334_v50 }
 0x100   : > { %v348_v53 = vadd.f32 %v346_v51, %v332_v49 }
 0x101   : > { %351 = vst [vmem:[#allocation2 + $0x8] sm:$0xff] %v349_v54 }
 0x102   : > { %350 = vst [vmem:[#allocation2] sm:$0xff] %v348_v53 }
 0x103 PF: > { %s1116_s0 = sld [smem:[#allocation11_spill]] }
 0x109   : > { %p352_p8 = scmp.eq.s32.totalorder %s1116_s0, 1  ;;  %p595_p9 = scmp.ne.s32.totalorder %s1116_s0, 1 }
 0x10a   : > { %s1117_s2 = sld [smem:[#allocation12_spill]] (!%p595_p9)  ;;  %s596_s19 = sshll.u32 (!%p595_p9), %s837_s17, 1 }
 0x10b   : > { %355 = sbr.rel (%p595_p9) target bundleno = 650 (0x28a), region = 52 }
 0x110   : > { %v358_v55 = vlaneseq  ;;  %s361_s20 = sadd.s32 %s1117_s2, %s596_s19  ;;  %v356_v58 = vld [vmem:[#allocation2] sm:$0xff]  ;;  %v357_v61 = vld [vmem:[#allocation2 + $0x8] sm:$0xff]  ;;  %v404_v63 = vld [vmem:[#allocation3] sm:$0xff]  ;;  %vm410_vm2 = vcmask 7168  }
 0x111   : > { %s597_s3 = sshll.u32 %s361_s20, 7  ;;  %v405_v5 = vld [vmem:[#allocation3 + $0x8] sm:$0xff]  ;;  %v413_v23 = vld [vmem:[#allocation4] sm:$0xff]  ;;  %v414_v30 = vld [vmem:[#allocation4 + $0x8] sm:$0xff] }
 0x112   : > { %v359_v56 = vand.u32 127, %v358_v55  ;;  %v363_v57 = vstv %s597_s3 }
 0x114   : > { %v364_v59 = vadd.s32 %v363_v57, %v359_v56 }
 0x116   : > { %vm365_vm1 = vcmp.lt.s32.totalorder %v364_v59, 384 }
 0x117   : > { %v366_v60 = vsel %vm365_vm1, %v356_v58, -inf  ;;  %v367_v62 = vsel %vm365_vm1, %v357_v61, -inf }
 0x118   : > { %368 = vmax.xlane.f32.xlu0 %v366_v60 }
 0x120   : > { %370 = vmax.xlane.f32.xlu0 %v367_v62 }
 0x18b   : > { %v369_v0 = vpop.xlane.xlu0 %368 }
 0x18c   : > { %vm372_vm3 = vcmp.eq.f32.partialorder %v366_v60, %v369_v0  ;;  %vm406_vm4 = vcmp.gt.f32.partialorder %v369_v0, %v404_v63 }
 0x18d   : > { %v408_v1 = vsel %vm406_vm4, %v369_v0, %v404_v63  ;;  %v374_v2 = vsel %vm372_vm3, %v364_v59, 2147483647 }
 0x18e   : > { %411 = vst.msk [vmem:[#allocation3] sm:$0xff] %vm410_vm2, %v408_v1  ;;  %v377_v3 = vshra.s32 %v374_v2, 16  ;;  %v376_v11 = vand.u32 65535, %v374_v2 }
 0x190   : > { %v379_v4 = vcvt.s32.f32 %v377_v3  ;;  %v378_v13 = vcvt.s32.f32 %v376_v11 }
 0x192   : > { %380 = vmin.xlane.f32.xlu1 %v379_v4 }
 0x193   : > { %v371_v6 = vpop.xlane.xlu0 %370 }
 0x194   : > { %vm373_vm5 = vcmp.eq.f32.partialorder %v367_v62, %v371_v6  ;;  %vm407_vm6 = vcmp.gt.f32.partialorder %v371_v6, %v405_v5 }
 0x195   : > { %v375_v7 = vsel %vm373_vm5, %v364_v59, 2147483647  ;;  %v409_v8 = vsel %vm407_vm6, %v371_v6, %v405_v5 }
 0x196   : > { %412 = vst.msk [vmem:[#allocation3 + $0x8] sm:$0xff] %vm410_vm2, %v409_v8  ;;  %v391_v9 = vshra.s32 %v375_v7, 16  ;;  %v390_v15 = vand.u32 65535, %v375_v7 }
 0x198   : > { %v393_v10 = vcvt.s32.f32 %v391_v9  ;;  %v392_v17 = vcvt.s32.f32 %v390_v15 }
 0x19a   : > { %394 = vmin.xlane.f32.xlu1 %v393_v10 }
 0x205   : > { %v381_v12 = vpop.xlane.xlu1 %380 }
 0x206   : > { %vm382_vm7 = vcmp.eq.f32.partialorder %v379_v4, %v381_v12  ;;  %v387_v19 = vcvt.f32.s32 %v381_v12 }
 0x207   : > { %v383_v14 = vsel %vm382_vm7, %v378_v13, inf }
 0x208   : > { %384 = vmin.xlane.f32.xlu2 %v383_v14  ;;  %v388_v21 = vshll.u32 %v387_v19, 16 }
 0x20d   : > { %v395_v16 = vpop.xlane.xlu1 %394 }
 0x20e   : > { %vm396_vm8 = vcmp.eq.f32.partialorder %v393_v10, %v395_v16  ;;  %v401_v25 = vcvt.f32.s32 %v395_v16 }
 0x20f   : > { %v397_v18 = vsel %vm396_vm8, %v392_v17, inf }
 0x210   : > { %398 = vmin.xlane.f32.xlu2 %v397_v18  ;;  %v402_v28 = vshll.u32 %v401_v25, 16 }
 0x27b   : > { %v385_v20 = vpop.xlane.xlu2 %384 }
 0x27c   : > { %v386_v22 = vcvt.f32.s32 %v385_v20 }
 0x27e   : > { %v389_v24 = vadd.s32 %v388_v21, %v386_v22 }
 0x280   : > { %v415_v26 = vsel %vm406_vm4, %v389_v24, %v413_v23 }
 0x281   : > { %417 = vst.msk [vmem:[#allocation4] sm:$0xff] %vm410_vm2, %v415_v26 }
 0x283   : > { %v399_v27 = vpop.xlane.xlu2 %398 }
 0x284   : > { %v400_v29 = vcvt.f32.s32 %v399_v27 }
 0x286   : > { %v403_v31 = vadd.s32 %v402_v28, %v400_v29 }
 0x288   : > { %v416_v32 = vsel %vm407_vm6, %v403_v31, %v414_v30 }
 0x289   : > { %418 = vst.msk [vmem:[#allocation4 + $0x8] sm:$0xff] %vm410_vm2, %v416_v32 }
 0x28a PF: > { %s1118_s17 = sld [smem:[#allocation12_spill]] }
 0x290   : > { %p419_p10 = scmp.eq.s32.totalorder %s1118_s17, 1 }
 0x292   : > { %p420_p11 = pnand %p419_p10, %p352_p8 }
 0x294   : > { %423 = sbr.rel (%p420_p11) target bundleno = 670 (0x29e), region = 56 }
 0x299   : > { %v424_v33 = vld [vmem:[#allocation3] sm:$0xff]  ;;  %vm426_vm9 = vcmask 7168   ;;  %v425_v34 = vld [vmem:[#allocation3 + $0x8] sm:$0xff]  ;;  %v429_v35 = vld [vmem:[#allocation4] sm:$0xff] }
 0x29a   : > { %427 = vst.msk [vmem:[%s1019_s11] sm:$0xff] %vm426_vm9, %v424_v33  ;;  %v430_v36 = vld [vmem:[#allocation4 + $0x8] sm:$0xff] }
 0x29b   : > { %428 = vst.msk [vmem:[%s1019_s11 + $0x8] sm:$0xff] %vm426_vm9, %v425_v34 }
 0x29c   : > { %431 = vst.msk [vmem:[%s1024_s25] sm:$0xff] %vm426_vm9, %v429_v35 }
 0x29d   : > { %432 = vst.msk [vmem:[%s1024_s25 + $0x8] sm:$0xff] %vm426_vm9, %v430_v36 }
 0x29e PF: > { %s18_s21 = sadd.s32 1, %s853_s21   ;;  %s1120_s23 = sld [smem:[#allocation13_spill]] }
 0x29f   : > { %p15_p12 = scmp.ge.s32.totalorder %s18_s21, 10   ;;  %s1121_s17 = sld [smem:[#allocation14_spill]] }
 0x2a0   : > { %s1122_s28 = sld [smem:[#allocation15_spill]]  ;;  %s1123_s12 = smov %s821_s13 }
 0x2a1   : > { %s1124_s13 = smov %s825_s14  ;;  %s1125_s14 = smov %s993_s16 }
 0x2a2   : > { %s1126_s15 = smov %s841_s18  ;;  %s1129_s19 = smov %s1136_s7 }
 0x2a3   : > { %s1130_s20 = smov %s1140_s8  ;;  %17 = sbr.rel (!%p15_p12) target bundleno = 11 (0xb), region = 106 }
 0x2a4   : > { %s1127_s16 = smov %s1120_s23 }
 0x2a6   : > { %s1128_s18 = smov %s1122_s28 }
 0x2a8   :  { %470 = vsyncpa [#allocation6], 1 }
 0x2a9   :  { %472 = vsyncpa [#allocation6 + $0x1], 1 }
 0x2aa   :  { %473 = vsyncpa [#allocation8], 1 }
 0x2ab   :  { %475 = vsyncpa [#allocation8 + $0x1], 1 }

</bundles_post_ra>
